<compile_context>
chip_gen: v7x
topology: tpu7x:2x2x1
jax: 0.10.0
libtpu: 0.0.40
codegen_flags: <defaults>
</compile_context>

<pallas_src>
import jax
import jax.numpy as jnp
from jax.experimental import pallas as pl
from jax.experimental.pallas import tpu as pltpu


def concat_composer_kernel(xi_ref, xt_ref,
                           s1i_ref, t1i_ref, s1t_ref, t1t_ref,
                           w1i_ref, w1t_ref, b1_ref,
                           w2_ref, b2_ref, out_ref):
    # BatchNorm1d #1 (eval, folded to per-channel affine) + ReLU on each half.
    hi = jnp.maximum(xi_ref[...] * s1i_ref[...] + t1i_ref[...], 0.0)   # (tb, E) f32
    ht = jnp.maximum(xt_ref[...] * t1t_ref.dtype.type(0) + xt_ref[...] * 0, 0.0)  # placeholder (overwritten below)
    ht = jnp.maximum(xt_ref[...] * s1t_ref[...] + t1t_ref[...], 0.0)   # (tb, E) f32

    # Linear(2E, 2E): the input concat is expressed as a sum of two half
    # matmuls (exact); BN2 is folded into W1/b1 in the wrapper.
    # bf16 operands, f32 accumulation on the MXU.
    h = (jnp.dot(hi.astype(jnp.bfloat16), w1i_ref[...],
                 preferred_element_type=jnp.float32)
         + jnp.dot(ht.astype(jnp.bfloat16), w1t_ref[...],
                   preferred_element_type=jnp.float32)
         + b1_ref[...])
    h = jnp.maximum(h, 0.0)
    # TODO(synk): Dropout(p) is identity in eval mode; training-mode dropout
    # and training-mode BN batch statistics are not implemented.

    # Linear(2E, E) -- output columns padded to a 128-lane multiple in the
    # wrapper so the store is an unmasked vst; sliced back to E downstream.
    out = jnp.dot(h.astype(jnp.bfloat16), w2_ref[...],
                  preferred_element_type=jnp.float32) + b2_ref[...]
    out_ref[...] = out.astype(out_ref.dtype)


def concat_compose(img_feat, txt_feat, params, *, block_b=2048):
    """img_feat, txt_feat: (B, E) float32. Returns (B, E) bfloat16."""
    B, E = img_feat.shape
    E2 = 2 * E
    eps = 1e-5

    # Fold BatchNorm1d (eval) into per-channel scale/shift.
    scale1 = params["bn1_gamma"] / jnp.sqrt(params["bn1_var"] + eps)
    shift1 = params["bn1_beta"] - params["bn1_mean"] * scale1
    scale2 = params["bn2_gamma"] / jnp.sqrt(params["bn2_var"] + eps)
    shift2 = params["bn2_beta"] - params["bn2_mean"] * scale2

    # PyTorch Linear weight is (out, in); transpose so the kernel does x @ W.
    # Fold BN2 into Linear1: (x@W1 + b1)*s2 + t2 = x@(W1*s2) + (b1*s2 + t2).
    w1 = params["w1"].T * scale2[None, :]                 # (2E, 2E) f32
    b1 = (params["b1"] * scale2 + shift2)[None, :]        # (1, 2E)  f32
    # Split W1 and the BN1 affine per input half -> no concat anywhere.
    w1_i = w1[:E, :].astype(jnp.bfloat16)                 # (E, 2E)
    w1_t = w1[E:, :].astype(jnp.bfloat16)                 # (E, 2E)
    s1_i, s1_t = scale1[None, :E], scale1[None, E:]
    t1_i, t1_t = shift1[None, :E], shift1[None, E:]

    # Pad the final output channel dim to a 128-lane multiple (unmasked vst).
    n_pad = pl.cdiv(E, 128) * 128
    w2 = params["w2"].T                                   # (2E, E)
    b2 = params["b2"]
    if n_pad > E:
        w2 = jnp.pad(w2, ((0, 0), (0, n_pad - E)))
        b2 = jnp.pad(b2, (0, n_pad - E))
    w2 = w2.astype(jnp.bfloat16)                          # (2E, n_pad)
    b2 = b2[None, :]                                      # (1, n_pad) f32

    # Batch tile: big (amortize ~0.35us/step), multiple of 8 sublanes, capped
    # at ~B/2 so v7x's two TensorCores both get grid steps when B > 8.
    # No batch padding: Pallas masks the partial trailing block.
    tb_half = max(8, pl.cdiv(pl.cdiv(B, 2), 8) * 8)
    tb = min(block_b, tb_half)
    grid = (pl.cdiv(B, tb),)

    const2d = lambda i: (0, 0)
    cost = pl.CostEstimate(
        flops=2 * B * E2 * (E2 + n_pad),
        transcendentals=0,
        bytes_accessed=(2 * B * E * 4                      # two f32 inputs
                        + B * n_pad * 2                    # bf16 output
                        + (w1_i.size + w1_t.size + w2.size) * 2   # bf16 weights
                        + (b1.size + b2.size + 2 * E2) * 4),      # f32 vectors
    )

    out = pl.pallas_call(
        concat_composer_kernel,
        out_shape=jax.ShapeDtypeStruct((B, n_pad), jnp.bfloat16),
        grid=grid,
        in_specs=[
            pl.BlockSpec((tb, E), lambda i: (i, 0)),      # img features (tiled)
            pl.BlockSpec((tb, E), lambda i: (i, 0)),      # text features (tiled)
            pl.BlockSpec((1, E), const2d),                # BN1 scale, img half
            pl.BlockSpec((1, E), const2d),                # BN1 shift, img half
            pl.BlockSpec((1, E), const2d),                # BN1 scale, txt half
            pl.BlockSpec((1, E), const2d),                # BN1 shift, txt half
            pl.BlockSpec((E, E2), const2d),               # W1 img half (bf16, resident)
            pl.BlockSpec((E, E2), const2d),               # W1 txt half (bf16, resident)
            pl.BlockSpec((1, E2), const2d),               # b1 (BN2 folded in)
            pl.BlockSpec((E2, n_pad), const2d),           # W2 (bf16, resident)
            pl.BlockSpec((1, n_pad), const2d),            # b2
        ],
        out_specs=pl.BlockSpec((tb, n_pad), lambda i: (i, 0)),
        compiler_params=pltpu.CompilerParams(
            dimension_semantics=("parallel",)),
        cost_estimate=cost,
    )(img_feat, txt_feat, s1_i, t1_i, s1_t, t1_t, w1_i, w1_t, b1, w2, b2)

    # bf16 result; drop the lane padding. Callers upcast only if they need f32.
    return out[:, :E] if n_pad > E else out


def make_params(key, embed_dim):
    """Deterministic synthetic parameters with the shapes from Composer.__init__."""
    E2 = 2 * embed_dim
    ks = jax.random.split(key, 12)
    return {
        # BatchNorm1d(2E) #1
        "bn1_gamma": 1.0 + 0.1 * jax.random.normal(ks[0], (E2,), jnp.float32),
        "bn1_beta": 0.1 * jax.random.normal(ks[1], (E2,), jnp.float32),
        "bn1_mean": 0.05 * jax.random.normal(ks[2], (E2,), jnp.float32),
        "bn1_var": jnp.abs(1.0 + 0.1 * jax.random.normal(ks[3], (E2,), jnp.float32)),
        # Linear(2E, 2E)
        "w1": 0.05 * jax.random.normal(ks[4], (E2, E2), jnp.float32),
        "b1": 0.01 * jax.random.normal(ks[5], (E2,), jnp.float32),
        # BatchNorm1d(2E) #2
        "bn2_gamma": 1.0 + 0.1 * jax.random.normal(ks[6], (E2,), jnp.float32),
        "bn2_beta": 0.1 * jax.random.normal(ks[7], (E2,), jnp.float32),
        "bn2_mean": 0.05 * jax.random.normal(ks[8], (E2,), jnp.float32),
        "bn2_var": jnp.abs(1.0 + 0.1 * jax.random.normal(ks[9], (E2,), jnp.float32)),
        # Linear(2E, E) -- independent keys (previously reused ks[4]/ks[5])
        "w2": 0.05 * jax.random.normal(ks[10], (embed_dim, E2), jnp.float32),
        "b2": 0.01 * jax.random.normal(ks[11], (embed_dim,), jnp.float32),
    }


def reference_compose(img_feat, txt_feat, params):
    """Plain-JAX (f32) reference for correctness checking."""
    eps = 1e-5
    f = jnp.concatenate([img_feat, txt_feat], axis=1)
    f = (f - params["bn1_mean"]) / jnp.sqrt(params["bn1_var"] + eps) * params["bn1_gamma"] + params["bn1_beta"]
    f = jnp.maximum(f, 0.0)
    f = f @ params["w1"].T + params["b1"]
    f = (f - params["bn2_mean"]) / jnp.sqrt(params["bn2_var"] + eps) * params["bn2_gamma"] + params["bn2_beta"]
    f = jnp.maximum(f, 0.0)
    f = f @ params["w2"].T + params["b2"]
    return f


if __name__ == "__main__":
    B, embed_dim = 8, 64   # small shapes; 2*embed_dim = 128 is lane-aligned

    key = jax.random.PRNGKey(0)
    k_img, k_txt, k_par = jax.random.split(key, 3)
    img_features = jax.random.normal(k_img, (B, embed_dim), jnp.float32)
    text_features = jax.random.normal(k_txt, (B, embed_dim), jnp.float32)
    params = make_params(k_par, embed_dim)

    out = concat_compose(img_features, text_features, params)
    out = jax.block_until_ready(out)

    ref = reference_compose(img_features, text_features, params)
    assert out.shape == (B, embed_dim)
    # Tolerance relaxed vs. pure-f32: MXU operands are bf16 (f32 accumulation)
    # and the result is stored in bf16.
    assert jnp.allclose(out.astype(jnp.float32), ref, atol=5e-2, rtol=5e-2), \
        "mismatch vs JAX reference"

    print("KERNEL_OK")
</pallas_src>

<mosaic_0001>
module attributes {stable_mosaic.version = 11 : i64} {
  func.func @concat_composer_kernel(%arg0: i32, %arg1: memref<8x64xf32, #tpu.memory_space<vmem>>, %arg2: memref<8x64xf32, #tpu.memory_space<vmem>>, %arg3: memref<1x64xf32, #tpu.memory_space<vmem>>, %arg4: memref<1x64xf32, #tpu.memory_space<vmem>>, %arg5: memref<1x64xf32, #tpu.memory_space<vmem>>, %arg6: memref<1x64xf32, #tpu.memory_space<vmem>>, %arg7: memref<64x128xbf16, #tpu.memory_space<vmem>>, %arg8: memref<64x128xbf16, #tpu.memory_space<vmem>>, %arg9: memref<1x128xf32, #tpu.memory_space<vmem>>, %arg10: memref<128x128xbf16, #tpu.memory_space<vmem>>, %arg11: memref<1x128xf32, #tpu.memory_space<vmem>>, %arg12: memref<8x128xbf16, #tpu.memory_space<vmem>>) attributes {dimension_semantics = [#tpu.dimension_semantics<parallel>], iteration_bounds = array<i64: 1>, scalar_prefetch = 0 : i64, scratch_operands = 0 : i64, tpu.core_type = #tpu.core_type<tc>, window_params = [{transform_indices = @transform_0, window_bounds = array<i64: 8, 64>}, {transform_indices = @transform_1, window_bounds = array<i64: 8, 64>}, {pipeline_mode = #tpu.pipeline_mode<synchronous>, transform_indices = @transform_2, window_bounds = array<i64: 1, 64>}, {pipeline_mode = #tpu.pipeline_mode<synchronous>, transform_indices = @transform_3, window_bounds = array<i64: 1, 64>}, {pipeline_mode = #tpu.pipeline_mode<synchronous>, transform_indices = @transform_4, window_bounds = array<i64: 1, 64>}, {pipeline_mode = #tpu.pipeline_mode<synchronous>, transform_indices = @transform_5, window_bounds = array<i64: 1, 64>}, {pipeline_mode = #tpu.pipeline_mode<synchronous>, transform_indices = @transform_6, window_bounds = array<i64: 64, 128>}, {pipeline_mode = #tpu.pipeline_mode<synchronous>, transform_indices = @transform_7, window_bounds = array<i64: 64, 128>}, {pipeline_mode = #tpu.pipeline_mode<synchronous>, transform_indices = @transform_8, window_bounds = array<i64: 1, 128>}, {pipeline_mode = #tpu.pipeline_mode<synchronous>, transform_indices = @transform_9, window_bounds = array<i64: 128, 128>}, {pipeline_mode = #tpu.pipeline_mode<synchronous>, transform_indices = @transform_10, window_bounds = array<i64: 1, 128>}, {transform_indices = @transform_11, window_bounds = array<i64: 8, 128>}]} {
    %c0 = arith.constant 0 : index
    %c0_0 = arith.constant 0 : index
    %0 = vector.load %arg1[%c0, %c0_0] : memref<8x64xf32, #tpu.memory_space<vmem>>, vector<8x64xf32>
    %c0_1 = arith.constant 0 : index
    %c0_2 = arith.constant 0 : index
    %1 = vector.load %arg3[%c0_1, %c0_2] : memref<1x64xf32, #tpu.memory_space<vmem>>, vector<1x64xf32>
    %2 = vector.broadcast %1 : vector<1x64xf32> to vector<8x64xf32>
    %3 = arith.mulf %0, %2 : vector<8x64xf32>
    %c0_3 = arith.constant 0 : index
    %c0_4 = arith.constant 0 : index
    %4 = vector.load %arg4[%c0_3, %c0_4] : memref<1x64xf32, #tpu.memory_space<vmem>>, vector<1x64xf32>
    %5 = vector.broadcast %4 : vector<1x64xf32> to vector<8x64xf32>
    %6 = arith.addf %3, %5 : vector<8x64xf32>
    %cst = arith.constant 0.000000e+00 : f32
    %7 = vector.broadcast %cst : f32 to vector<8x64xf32>
    %8 = arith.maximumf %6, %7 : vector<8x64xf32>
    %c0_5 = arith.constant 0 : index
    %c0_6 = arith.constant 0 : index
    %9 = vector.load %arg2[%c0_5, %c0_6] : memref<8x64xf32, #tpu.memory_space<vmem>>, vector<8x64xf32>
    %c0_7 = arith.constant 0 : index
    %c0_8 = arith.constant 0 : index
    %10 = vector.load %arg5[%c0_7, %c0_8] : memref<1x64xf32, #tpu.memory_space<vmem>>, vector<1x64xf32>
    %11 = vector.broadcast %10 : vector<1x64xf32> to vector<8x64xf32>
    %12 = arith.mulf %9, %11 : vector<8x64xf32>
    %c0_9 = arith.constant 0 : index
    %c0_10 = arith.constant 0 : index
    %13 = vector.load %arg6[%c0_9, %c0_10] : memref<1x64xf32, #tpu.memory_space<vmem>>, vector<1x64xf32>
    %14 = vector.broadcast %13 : vector<1x64xf32> to vector<8x64xf32>
    %15 = arith.addf %12, %14 : vector<8x64xf32>
    %cst_11 = arith.constant 0.000000e+00 : f32
    %16 = vector.broadcast %cst_11 : f32 to vector<8x64xf32>
    %17 = arith.maximumf %15, %16 : vector<8x64xf32>
    %18 = arith.truncf %8 : vector<8x64xf32> to vector<8x64xbf16>
    %c0_12 = arith.constant 0 : index
    %c0_13 = arith.constant 0 : index
    %19 = vector.load %arg7[%c0_12, %c0_13] : memref<64x128xbf16, #tpu.memory_space<vmem>>, vector<64x128xbf16>
    %cst_14 = arith.constant dense<0.000000e+00> : vector<8x128xf32>
    %20 = tpu.matmul %18, %19, %cst_14 {dimension_numbers = #tpu.dot_dimension_numbers<[1], [0], [0], [1], [0, 0, 1, 1], [], []>} : vector<8x64xbf16>, vector<64x128xbf16>, vector<8x128xf32> -> vector<8x128xf32>
    %21 = arith.truncf %17 : vector<8x64xf32> to vector<8x64xbf16>
    %c0_15 = arith.constant 0 : index
    %c0_16 = arith.constant 0 : index
    %22 = vector.load %arg8[%c0_15, %c0_16] : memref<64x128xbf16, #tpu.memory_space<vmem>>, vector<64x128xbf16>
    %cst_17 = arith.constant dense<0.000000e+00> : vector<8x128xf32>
    %23 = tpu.matmul %21, %22, %cst_17 {dimension_numbers = #tpu.dot_dimension_numbers<[1], [0], [0], [1], [0, 0, 1, 1], [], []>} : vector<8x64xbf16>, vector<64x128xbf16>, vector<8x128xf32> -> vector<8x128xf32>
    %24 = arith.addf %20, %23 : vector<8x128xf32>
    %c0_18 = arith.constant 0 : index
    %c0_19 = arith.constant 0 : index
    %25 = vector.load %arg9[%c0_18, %c0_19] : memref<1x128xf32, #tpu.memory_space<vmem>>, vector<1x128xf32>
    %26 = vector.broadcast %25 : vector<1x128xf32> to vector<8x128xf32>
    %27 = arith.addf %24, %26 : vector<8x128xf32>
    %cst_20 = arith.constant 0.000000e+00 : f32
    %28 = vector.broadcast %cst_20 : f32 to vector<8x128xf32>
    %29 = arith.maximumf %27, %28 : vector<8x128xf32>
    %30 = arith.truncf %29 : vector<8x128xf32> to vector<8x128xbf16>
    %c0_21 = arith.constant 0 : index
    %c0_22 = arith.constant 0 : index
    %31 = vector.load %arg10[%c0_21, %c0_22] : memref<128x128xbf16, #tpu.memory_space<vmem>>, vector<128x128xbf16>
    %cst_23 = arith.constant dense<0.000000e+00> : vector<8x128xf32>
    %32 = tpu.matmul %30, %31, %cst_23 {dimension_numbers = #tpu.dot_dimension_numbers<[1], [0], [0], [1], [0, 0, 1, 1], [], []>} : vector<8x128xbf16>, vector<128x128xbf16>, vector<8x128xf32> -> vector<8x128xf32>
    %c0_24 = arith.constant 0 : index
    %c0_25 = arith.constant 0 : index
    %33 = vector.load %arg11[%c0_24, %c0_25] : memref<1x128xf32, #tpu.memory_space<vmem>>, vector<1x128xf32>
    %34 = vector.broadcast %33 : vector<1x128xf32> to vector<8x128xf32>
    %35 = arith.addf %32, %34 : vector<8x128xf32>
    %36 = arith.truncf %35 : vector<8x128xf32> to vector<8x128xbf16>
    %c0_26 = arith.constant 0 : index
    %c0_27 = arith.constant 0 : index
    %37 = vector.load %arg12[%c0_26, %c0_27] : memref<8x128xbf16, #tpu.memory_space<vmem>>, vector<8x128xbf16>
    tpu.vector_store %arg12[%c0_26, %c0_27], %36 {strides = array<i32>} : memref<8x128xbf16, #tpu.memory_space<vmem>>, vector<8x128xbf16>,
    return
  }
  func.func @transform_0(%arg0: i32) -> (i32, i32) {
    %c0_i32 = arith.constant 0 : i32
    %c0_i32_0 = arith.constant 0 : i32
    return %arg0, %c0_i32 : i32, i32
  }
  func.func @transform_1(%arg0: i32) -> (i32, i32) {
    %c0_i32 = arith.constant 0 : i32
    %c0_i32_0 = arith.constant 0 : i32
    return %arg0, %c0_i32 : i32, i32
  }
  func.func @transform_2(%arg0: i32) -> (i32, i32) {
    %c0_i32 = arith.constant 0 : i32
    %c0_i32_0 = arith.constant 0 : i32
    %c0_i32_1 = arith.constant 0 : i32
    return %c0_i32, %c0_i32_0 : i32, i32
  }
  func.func @transform_3(%arg0: i32) -> (i32, i32) {
    %c0_i32 = arith.constant 0 : i32
    %c0_i32_0 = arith.constant 0 : i32
    %c0_i32_1 = arith.constant 0 : i32
    return %c0_i32, %c0_i32_0 : i32, i32
  }
  func.func @transform_4(%arg0: i32) -> (i32, i32) {
    %c0_i32 = arith.constant 0 : i32
    %c0_i32_0 = arith.constant 0 : i32
    %c0_i32_1 = arith.constant 0 : i32
    return %c0_i32, %c0_i32_0 : i32, i32
  }
  func.func @transform_5(%arg0: i32) -> (i32, i32) {
    %c0_i32 = arith.constant 0 : i32
    %c0_i32_0 = arith.constant 0 : i32
    %c0_i32_1 = arith.constant 0 : i32
    return %c0_i32, %c0_i32_0 : i32, i32
  }
  func.func @transform_6(%arg0: i32) -> (i32, i32) {
    %c0_i32 = arith.constant 0 : i32
    %c0_i32_0 = arith.constant 0 : i32
    %c0_i32_1 = arith.constant 0 : i32
    return %c0_i32, %c0_i32_0 : i32, i32
  }
  func.func @transform_7(%arg0: i32) -> (i32, i32) {
    %c0_i32 = arith.constant 0 : i32
    %c0_i32_0 = arith.constant 0 : i32
    %c0_i32_1 = arith.constant 0 : i32
    return %c0_i32, %c0_i32_0 : i32, i32
  }
  func.func @transform_8(%arg0: i32) -> (i32, i32) {
    %c0_i32 = arith.constant 0 : i32
    %c0_i32_0 = arith.constant 0 : i32
    %c0_i32_1 = arith.constant 0 : i32
    return %c0_i32, %c0_i32_0 : i32, i32
  }
  func.func @transform_9(%arg0: i32) -> (i32, i32) {
    %c0_i32 = arith.constant 0 : i32
    %c0_i32_0 = arith.constant 0 : i32
    %c0_i32_1 = arith.constant 0 : i32
    return %c0_i32, %c0_i32_0 : i32, i32
  }
  func.func @transform_10(%arg0: i32) -> (i32, i32) {
    %c0_i32 = arith.constant 0 : i32
    %c0_i32_0 = arith.constant 0 : i32
    %c0_i32_1 = arith.constant 0 : i32
    return %c0_i32, %c0_i32_0 : i32, i32
  }
  func.func @transform_11(%arg0: i32) -> (i32, i32) {
    %c0_i32 = arith.constant 0 : i32
    %c0_i32_0 = arith.constant 0 : i32
    return %arg0, %c0_i32 : i32, i32
  }
}

</mosaic_0001>

<bundles_post_ra>
// kernel: tpu_custom_call.1
= control target key start
LH: loop header
LB: loop body
LE: loop exit
PB: predicated region body
PF: predicated region fallthrough
CT: control target
= control target key end

     0   :  { %16 = vsyncpa [#allocation3], 0  ;;  %s879_s0 = inlined_call_operand.hbm [shape: f32[8,64], index: 0, kind: input, shape index: {}]   ;;  %s880_s1 = inlined_call_operand.hbm [shape: f32[8,64], index: 1, kind: input, shape index: {}]   ;;  %s881_s2 = inlined_call_operand.vmem [shape: f32[1,64], index: 2, kind: input, shape index: {}]   ;;  %s882_s3 = inlined_call_operand.vmem [shape: f32[1,64], index: 3, kind: input, shape index: {}]   ;;  %s883_s4 = inlined_call_operand.vmem [shape: f32[1,64], index: 4, kind: input, shape index: {}]   ;;  %s884_s5 = inlined_call_operand.vmem [shape: f32[1,64], index: 5, kind: input, shape index: {}]   ;;  %s885_s6 = inlined_call_operand.hbm [shape: bf16[64,128], index: 6, kind: input, shape index: {}]   ;;  %s886_s7 = inlined_call_operand.hbm [shape: bf16[64,128], index: 7, kind: input, shape index: {}]   ;;  %s887_s8 = inlined_call_operand.vmem [shape: f32[1,128], index: 8, kind: input, shape index: {}]   ;;  %s888_s9 = inlined_call_operand.hbm [shape: bf16[128,128], index: 9, kind: input, shape index: {}]   ;;  %s889_s10 = inlined_call_operand.vmem [shape: f32[1,128], index: 10, kind: input, shape index: {}]   ;;  %s890_s11 = inlined_call_operand.hbm [shape: bf16[8,128], index: 11, kind: output, shape index: {}]  }
   0x1   :  { %17 = vsyncpa [#allocation6], 0 }
   0x2   :  { %18 = vsyncpa [#allocation9], 0 }
   0x3   :  { %19 = vsyncpa [#allocation4], 0  ;;  %s686_s17 = smov [#allocation5]   ;;  %s546_s21 = scalar_lea.hbm %s880_s1, 128 }
   0x4   :  { %s36_s18 = sshll.u32 %s686_s17, 4  ;;  %p547_p0 = scmp.ne.s32.totalorder %s880_s1, %s546_s21  ;;  %s37_s18 = int_to_ptr.vmem [resolvable:$true] %s36_s18 }
   0x5   :  { %p550_p1 = scmp.lt.u32.totalorder %s546_s21, %s880_s1 }
   0x7   :  { %p552_p2 = pnand %p550_p1, %p547_p0 }
   0x9   :  { %555 = shalt.err (!%p552_p2)
}
   0xa   :  { %s556_s26 = scalar_lea.vmem %s37_s18, 128  ;;  %p561_p4 = scmp.lt.s32.totalorder %s37_s18, %s37_s18 }
   0xb   :  { %p557_p3 = scmp.ne.s32.totalorder %s37_s18, %s556_s26  ;;  %p562_p5 = scmp.lt.s32.totalorder %s556_s26, %s556_s26 }
   0xd   :  { %p563_p6 = por %p562_p5, %p561_p4 }
   0xf   :  { %p564_p7 = pnand %p563_p6, %p557_p3 }
  0x11   :  { %567 = shalt.err (!%p564_p7)
}
  0x12   :  { %39 = dma.hbm_to_vmem [thread:$0]  %s880_s1, 128, %s37_s18, [#allocation6]  }
  0x13   :  { %s687_s29 = smov [#allocation8]   ;;  %s688_s12 = smov [#allocation2]  }
  0x14   :  { %s65_s30 = sshll.u32 %s687_s29, 4  ;;  %s26_s13 = sshll.u32 %s688_s12, 4  ;;  %s66_s30 = int_to_ptr.vmem [resolvable:$true] %s65_s30  ;;  %s27_s13 = int_to_ptr.vmem [resolvable:$true] %s26_s13 }
  0x15   :  { %s568_s16 = scalar_lea.hbm %s886_s7, 512 }
  0x16   :  { %p569_p8 = scmp.ne.s32.totalorder %s886_s7, %s568_s16  ;;  %p572_p9 = scmp.lt.u32.totalorder %s568_s16, %s886_s7 }
  0x18   :  { %p574_p10 = pnand %p572_p9, %p569_p8 }
  0x1a   :  { %577 = shalt.err (!%p574_p10)
}
  0x1b   :  { %s578_s1 = scalar_lea.vmem %s66_s30, 512  ;;  %p583_p12 = scmp.lt.s32.totalorder %s66_s30, %s66_s30 }
  0x1c   :  { %p579_p11 = scmp.ne.s32.totalorder %s66_s30, %s578_s1  ;;  %p584_p13 = scmp.lt.s32.totalorder %s578_s1, %s578_s1 }
  0x1e   :  { %p585_p0 = por %p584_p13, %p583_p12 }
  0x20   :  { %p586_p1 = pnand %p585_p0, %p579_p11 }
  0x22   :  { %589 = shalt.err (!%p586_p1)
}
  0x23   :  { %s689_s18 = smov 64   ;;  %s690_s22 = smov 4  }
  0x24   :  { %71 = dma.hbm_to_vmem [thread:$0]  %s886_s7, 512, %s66_s30, [#allocation9], %s689_s18, %s689_s18, %s690_s22  }
  0x25   :  { %s590_s27 = scalar_lea.hbm %s879_s0, 128 }
  0x26   :  { %p591_p2 = scmp.ne.s32.totalorder %s879_s0, %s590_s27  ;;  %p594_p3 = scmp.lt.u32.totalorder %s590_s27, %s879_s0 }
  0x28   :  { %p596_p4 = pnand %p594_p3, %p591_p2 }
  0x2a   :  { %599 = shalt.err (!%p596_p4)
}
  0x2b   :  { %s600_s15 = scalar_lea.vmem %s27_s13, 128  ;;  %p605_p6 = scmp.lt.s32.totalorder %s27_s13, %s27_s13 }
  0x2c   :  { %p601_p5 = scmp.ne.s32.totalorder %s27_s13, %s600_s15  ;;  %p606_p7 = scmp.lt.s32.totalorder %s600_s15, %s600_s15 }
  0x2e   :  { %p607_p8 = por %p606_p7, %p605_p6 }
  0x30   :  { %p608_p9 = pnand %p607_p8, %p601_p5 }
  0x32   :  { %611 = shalt.err (!%p608_p9)
}
  0x33   :  { %29 = dma.hbm_to_vmem [thread:$0]  %s879_s0, 128, %s27_s13, [#allocation3]  }
  0x34   :  { %s691_s16 = smov [#allocation7]   ;;  %s692_s19 = smov [#allocation10]  }
  0x35   :  { %s53_s17 = sshll.u32 %s691_s16, 4  ;;  %s79_s20 = sshll.u32 %s692_s19, 4  ;;  %s54_s17 = int_to_ptr.vmem [resolvable:$true] %s53_s17  ;;  %s80_s20 = int_to_ptr.vmem [resolvable:$true] %s79_s20 }
  0x36   :  { %s612_s23 = scalar_lea.hbm %s885_s6, 512 }
  0x37   :  { %p613_p10 = scmp.ne.s32.totalorder %s885_s6, %s612_s23  ;;  %p616_p11 = scmp.lt.u32.totalorder %s612_s23, %s885_s6 }
  0x39   :  { %p618_p12 = pnand %p616_p11, %p613_p10 }
  0x3b   :  { %621 = shalt.err (!%p618_p12)
}
  0x3c   :  { %s622_s0 = scalar_lea.vmem %s54_s17, 512  ;;  %p627_p0 = scmp.lt.s32.totalorder %s54_s17, %s54_s17 }
  0x3d   :  { %p623_p13 = scmp.ne.s32.totalorder %s54_s17, %s622_s0  ;;  %p628_p1 = scmp.lt.s32.totalorder %s622_s0, %s622_s0 }
  0x3f   :  { %p629_p2 = por %p628_p1, %p627_p0 }
  0x41   :  { %p630_p3 = pnand %p629_p2, %p623_p13 }
  0x43   :  { %633 = shalt.err (!%p630_p3)
}
  0x44   :  { %59 = dma.hbm_to_vmem [thread:$0]  %s885_s6, 512, %s54_s17, [#allocation6], %s689_s18, %s689_s18, %s690_s22  }
  0x45   :  { %s634_s14 = scalar_lea.hbm %s888_s9, 1024 }
  0x46   :  { %p635_p4 = scmp.ne.s32.totalorder %s888_s9, %s634_s14  ;;  %p638_p5 = scmp.lt.u32.totalorder %s634_s14, %s888_s9 }
  0x48   :  { %p640_p6 = pnand %p638_p5, %p635_p4 }
  0x4a   :  { %643 = shalt.err (!%p640_p6)
}
  0x4b   :  { %s644_s19 = scalar_lea.vmem %s80_s20, 1024  ;;  %p649_p8 = scmp.lt.s32.totalorder %s80_s20, %s80_s20 }
  0x4c   :  { %p645_p7 = scmp.ne.s32.totalorder %s80_s20, %s644_s19  ;;  %p650_p9 = scmp.lt.s32.totalorder %s644_s19, %s644_s19 }
  0x4e   :  { %p651_p10 = por %p650_p9, %p649_p8 }
  0x50   :  { %p652_p11 = pnand %p651_p10, %p645_p7 }
  0x52   :  { %655 = shalt.err (!%p652_p11)
}
  0x53   :  { %85 = dma.hbm_to_vmem [thread:$0]  %s888_s9, 1024, %s80_s20, [#allocation9], %s689_s18, %s689_s18, %s690_s22  }
  0x54   :  { %678 = dma.done.wait [#allocation3], 128  }
  0x55   :  { %679 = vsyncadd [#allocation3], 4294967168 }
  0x56   :  { %680 = dma.done.wait [#allocation6], 640  }
  0x57   :  { %681 = vsyncadd [#allocation6], 4294966656 }
  0x58   :  { %682 = dma.done.wait [#allocation9], 1536  }
  0x59   :  { %683 = vsyncadd [#allocation9], 4294965760  ;;  %v693_v0 = vmov 0.0   ;;  %vm694_vm0 = vmmov 0   ;;  %v530_v1 = vld [vmem:[#allocation8] sm:$0xff]   ;;  %v531_v2 = vld [vmem:[#allocation8 + $0x8] sm:$0xff]  }
  0x5a   :  { %476 = vmatprep.subr.bf16.mxu1 %v693_v0  ;;  %484 = vmatprep.mubr.msk.bf16.mxu1 %vm694_vm0, %v693_v0  ;;  %v122_v3 = vld [vmem:[#allocation5] sm:$0xff]  ;;  %v435_v4 = vld [vmem:[%s883_s4] ss:$0 sm:$0xff]  ;;  %v538_v11 = vld [vmem:[#allocation10] sm:$0xff]   ;;  %vm182_vm1 = vcmask 523264   ;;  %s695_s25 = smov [#allocation11]  }
  0x5b   :  { %500 = vmatprep.subr.bf16.mxu0 %v693_v0  ;;  %516 = vmatprep.mubr.msk.bf16.mxu0 %vm694_vm0, %v693_v0  ;;  %v436_v5 = vld [vmem:[%s884_s5] ss:$0 sm:$0xff]  ;;  %v130_v6 = vmul.f32 %v435_v4, %v122_v3  ;;  %v533_v9 = vld [vmem:[#allocation8 + $0x18] sm:$0xff]   ;;  %v539_v12 = vld [vmem:[#allocation10 + $0x8] sm:$0xff]   ;;  %s422_s26 = sshll.u32 %s695_s25, 4  ;;  %s423_s26 = int_to_ptr.vmem [resolvable:$true] %s422_s26 }
  0x5c   :  { %477 = vmatpush3.bf16.msra.mxu1 %v530_v1  ;;  %v532_v7 = vld [vmem:[#allocation8 + $0x10] sm:$0xff]   ;;  %v534_v13 = vld [vmem:[#allocation7] sm:$0xff]   ;;  %501 = vmatpush3.bf16.msra.mxu0 %v538_v11  ;;  %v535_v18 = vld [vmem:[#allocation7 + $0x8] sm:$0xff]   ;;  %p661_p13 = scmp.lt.s32.totalorder %s423_s26, %s423_s26 }
  0x5d   :  { %478 = vmatprep.subr.bf16.mxu1 %v693_v0  ;;  %v138_v8 = vadd.f32 %v436_v5, %v130_v6  ;;  %v104_v14 = vld [vmem:[#allocation2] sm:$0xff]  ;;  %502 = vmatprep.subr.bf16.mxu0 %v693_v0  ;;  %v537_v23 = vld [vmem:[#allocation7 + $0x18] sm:$0xff]   ;;  %v542_v27 = vld [vmem:[#allocation10 + $0x20] sm:$0xff]  }
  0x5e   :  { %v433_v16 = vld [vmem:[%s881_s2] ss:$0 sm:$0xff]  ;;  %v541_v26 = vld [vmem:[#allocation10 + $0x18] sm:$0xff]   ;;  %v543_v28 = vld [vmem:[#allocation10 + $0x28] sm:$0xff]  }
  0x5f   :  { %v139_v10 = vmax.f32 %v138_v8, 0.0  ;;  %v112_v17 = vmul.f32 %v433_v16, %v104_v14  ;;  %v434_v19 = vld [vmem:[%s882_s3] ss:$0 sm:$0xff]  ;;  %v545_v30 = vld [vmem:[#allocation10 + $0x38] sm:$0xff]  }
  0x60   :  { %479 = vmatpush3.bf16.msra.mxu1 %v531_v2  ;;  %503 = vmatpush3.bf16.msra.mxu0 %v539_v12  ;;  %v536_v21 = vld [vmem:[#allocation7 + $0x10] sm:$0xff]  }
  0x61   :  { %480 = vmatprep.subr.bf16.mxu1 %v693_v0  ;;  %v149_v15 = vpack.c.bf16 %v139_v10, %v139_v10  ;;  %504 = vmatprep.subr.bf16.mxu0 %v693_v0  ;;  %v120_v20 = vadd.f32 %v434_v19, %v112_v17  ;;  %v540_v25 = vld [vmem:[#allocation10 + $0x10] sm:$0xff]  }
  0x62   :  { %v544_v29 = vld [vmem:[#allocation10 + $0x30] sm:$0xff]  }
  0x63   :  { %v121_v22 = vmax.f32 %v120_v20, 0.0  ;;  %v447_v36 = vld [vmem:[%s887_s8] ss:$0 sm:$0xff]  ;;  %s656_s8 = scalar_lea.vmem %s423_s26, 64 }
  0x64   :  { %481 = vmatpush3.bf16.msra.mxu1 %v532_v7  ;;  %505 = vmatpush3.bf16.msra.mxu0 %v540_v25  ;;  %v448_v44 = vld [vmem:[%s889_s10] ss:$0 sm:$0xff]  ;;  %p657_p12 = scmp.ne.s32.totalorder %s423_s26, %s656_s8  ;;  %p662_p0 = scmp.lt.s32.totalorder %s656_s8, %s656_s8 }
  0x65   :  { %482 = vmatprep.subr.bf16.mxu1 %v693_v0  ;;  %v140_v24 = vpack.c.bf16 %v121_v22, %v121_v22  ;;  %506 = vmatprep.subr.bf16.mxu0 %v693_v0 }
  0x66   :  { %p663_p1 = por %p662_p0, %p661_p13 }
  0x68   :  { %483 = vmatpush3.bf16.msra.mxu1 %v533_v9  ;;  %507 = vmatpush3.bf16.msra.mxu0 %v541_v26  ;;  %p664_p2 = pnand %p663_p1, %p657_p12 }
  0x69   :  { %488 = vmatprep.subr.bf16.mxu1 %v693_v0  ;;  %508 = vmatprep.subr.bf16.mxu0 %v693_v0 }
  0x6b   :  { %485 = vmatmul.mubr.msk.bf16.vlgmr.msra.gmra.mrb[0].mxu1 %vm182_vm1, %v149_v15 }
  0x6c   :  { %489 = vmatpush3.bf16.msra.mxu1 %v534_v13  ;;  %496 = vmatprep.mubr.msk.bf16.mxu1 %vm694_vm0, %v693_v0 }
  0x6d   :  { %490 = vmatprep.subr.bf16.mxu1 %v693_v0  ;;  %509 = vmatpush3.bf16.msra.mxu0 %v542_v27 }
  0x6e   :  { %510 = vmatprep.subr.bf16.mxu0 %v693_v0 }
  0x70   :  { %491 = vmatpush3.bf16.msra.mxu1 %v535_v18 }
  0x71   :  { %492 = vmatprep.subr.bf16.mxu1 %v693_v0  ;;  %511 = vmatpush3.bf16.msra.mxu0 %v543_v28 }
  0x72   :  { %512 = vmatprep.subr.bf16.mxu0 %v693_v0 }
  0x74   :  { %493 = vmatpush3.bf16.msra.mxu1 %v536_v21 }
  0x75   :  { %494 = vmatprep.subr.bf16.mxu1 %v693_v0  ;;  %513 = vmatpush3.bf16.msra.mxu0 %v544_v29 }
  0x76   :  { %514 = vmatprep.subr.bf16.mxu0 %v693_v0 }
  0x78   :  { %495 = vmatpush3.bf16.msra.mxu1 %v537_v23 }
  0x79   :  { %515 = vmatpush3.bf16.msra.mxu0 %v545_v30 }
  0x7b   :  { %497 = vmatmul.mubr.msk.bf16.vlgmr.msra.gmra.mrb[4].mxu1 %vm182_vm1, %v140_v24 }
 0x13e   :  { %v220_v31 = vpop.f32.mrb[0].mxu1 }
 0x13f   :  { %v486_v32 = vpop.f32.mrb[1].mxu1 }
 0x140   :  { %v223_v33 = vpop.f32.mrb[2].mxu1 }
 0x141   :  { %v487_v34 = vpop.f32.mrb[3].mxu1 }
 0x14e   :  { %v287_v35 = vpop.f32.mrb[4].mxu1 }
 0x14f   :  { %v288_v37 = vadd.f32 %v287_v35, %v220_v31  ;;  %v498_v38 = vpop.f32.mrb[5].mxu1 }
 0x150   :  { %v290_v39 = vpop.f32.mrb[6].mxu1 }
 0x151   :  { %v300_v40 = vadd.f32 %v447_v36, %v288_v37  ;;  %v499_v41 = vpop.f32.mrb[7].mxu1 }
 0x153   :  { %v301_v42 = vmax.f32 %v300_v40, 0.0 }
 0x155   :  { %v302_v43 = vpack.c.bf16 %v301_v42, %v301_v42 }
 0x157   :  { %517 = vmatmul.mubr.bf16.vlgmr.msra.gmra.mrb[0].mxu0 %v302_v43 }
 0x22a   :  { %v408_v45 = vpop.f32.mrb[0].mxu0 }
 0x22b   :  { %v409_v46 = vadd.f32 %v448_v44, %v408_v45  ;;  %v518_v47 = vpop.f32.mrb[1].mxu0 }
 0x22c   :  { %v411_v48 = vpop.f32.mrb[2].mxu0 }
 0x22d   :  { %v414_v49 = vpack.c.bf16 %v409_v46, %v409_v46  ;;  %v519_v50 = vpop.f32.mrb[3].mxu0 }
 0x22f   :  { %415 = vst [vmem:[#allocation11] sm:$0xf] %v414_v49 }
 0x230   :  { %667 = shalt.err (!%p664_p2)
}
 0x231   :  { %s668_s10 = scalar_lea.hbm %s890_s11, 64 }
 0x232   :  { %p669_p3 = scmp.ne.s32.totalorder %s890_s11, %s668_s10  ;;  %p672_p4 = scmp.lt.u32.totalorder %s668_s10, %s890_s11 }
 0x234   :  { %p674_p5 = pnand %p672_p4, %p669_p3 }
 0x236   :  { %677 = shalt.err (!%p674_p5)
}
 0x237   :  { %425 = dma.vmem_to_hbm [thread:$0]  %s423_s26, 64, %s890_s11, [#allocation4]  }
 0x238   :  { %684 = dma.done.wait [#allocation4], 64  }
 0x239   :  { %685 = vsyncadd [#allocation4], 4294967232 }
 0x23a   :  { %429 = vsyncpa [#allocation3], 1 }
 0x23b   :  { %430 = vsyncpa [#allocation6], 1 }
 0x23c   :  { %431 = vsyncpa [#allocation9], 1 }
 0x23d   :  { %432 = vsyncpa [#allocation4], 1 }

</bundles_post_ra>
